<compile_context>
chip_gen: v5e
topology: v5e:2x2
jax: 0.10.0
libtpu: 0.0.40
codegen_flags: <defaults>
</compile_context>

<pallas_src>
import jax
import jax.numpy as jnp
from jax.experimental import pallas as pl
from jax.experimental.pallas import tpu as pltpu


def ndm_kernel(x_ref, w1t_ref, tb_ref, w2ta_ref, b2a_ref, mean_ref):
    # x_ref:    (1, C, TP)   pixels on lanes, storage dtype (bf16 or f32)
    # w1t_ref:  (Hd, C)      W1 transposed, f32
    # tb_ref:   (1, Hd, 1)   per-batch time bias  t*Wt + b1, f32
    # w2ta_ref: (1, C, Hd)   per-batch alpha * W2^T, f32
    # b2a_ref:  (1, C, 1)    per-batch alpha * b2, f32
    # mean_ref: (1, C, TP)   storage dtype
    x = x_ref[0].astype(jnp.float32)                                    # [C, TP]

    h = jnp.dot(w1t_ref[...], x, preferred_element_type=jnp.float32)    # [Hd, TP]
    # TODO(synk): a bf16 tanh would double EUP throughput on v6e/v7x; kept f32
    # so the same kernel also runs on v5e (no bf16 VPU/EUP there).
    h = jnp.tanh(h + tb_ref[0])                                          # + [Hd, 1]

    out = jnp.dot(w2ta_ref[0], h, preferred_element_type=jnp.float32)    # [C, TP]
    out = out + b2a_ref[0]                                                # + [C, 1]

    mean_ref[0] = out.astype(mean_ref.dtype)


def _pick_pixel_tile(hw, c, dtype_bytes, batch, target_block_bytes=4 << 20):
    """Lane-dense pixel tile sized from an HBM-bytes budget.

    ~4 MiB per x block amortizes the ~0.35 us per-grid-step overhead while
    keeping the double-buffered x+mean footprint (2 * 2 * block_bytes) under
    the 32 MiB default scoped-VMEM limit on all of v5e / v6e / v7x.
    """
    budget_tp = max(128, (target_block_bytes // (c * dtype_bytes)) // 128 * 128)
    tp = hw if hw <= budget_tp else budget_tp     # block == full dim is legal
    # Keep >= 2 parallel grid steps so both v7x TensorCores get work.
    if batch * pl.cdiv(hw, tp) < 2 and hw > 128:
        tp = max(128, -(-((hw + 1) // 2) // 128) * 128)
    return tp


def ndm_forward(x, t, params, *, target_block_bytes=4 << 20):
    """x: [B, C, H, W] (f32 or bf16), t: [B, 1, 1, 1]. Returns (mean, sigma, alpha).

    mean is returned in x.dtype (the kernel streams x/mean in the storage
    dtype and computes in f32); sigma/alpha are f32.
    """
    B, C, H, W = x.shape
    HW = H * W
    Hd = params["w1"].shape[1]

    io_dtype = x.dtype if x.dtype in (jnp.bfloat16, jnp.float32) else jnp.float32
    itemsize = jnp.dtype(io_dtype).itemsize

    t32 = t.astype(jnp.float32)

    # ---- O(B) time-dependent math in plain XLA (not per pixel) -------------
    s = (0.99 - t32) * 0.0001
    q = jnp.sqrt(t32 + s)
    alpha = jnp.sqrt(1.0 - q)                          # [B, 1, 1, 1]
    sigma = jnp.sqrt(q)                                # [B, 1, 1, 1]

    t_bias = (t32.reshape(B, 1) @ params["wt"] + params["b1"])[:, :, None]  # [B,Hd,1]

    # alpha folded into per-batch second-layer weights/bias (tiny arrays).
    alpha_b = alpha.reshape(B, 1, 1)                   # [B, 1, 1]
    w2ta = alpha_b * params["w2"].T[None]              # [B, C, Hd]
    b2a = alpha_b * params["b2"].reshape(1, C, 1)      # [B, C, 1]
    w1t = params["w1"].T                               # [Hd, C]

    # ---- kernel launch: free reshape NCHW -> [B, C, HW], pixels on lanes ---
    x_io = x.reshape(B, C, HW).astype(io_dtype)

    TP = _pick_pixel_tile(HW, C, itemsize, B, target_block_bytes)
    grid = (B, pl.cdiv(HW, TP))                        # ragged last block is masked

    # With the default 4 MiB budget the double-buffered x+mean footprint is
    # ~16 MiB (< 32 MiB scoped default on every generation); only raise the
    # scoped-VMEM limit if the caller asks for much larger blocks.
    dbl_buf_bytes = 2 * 2 * C * TP * itemsize
    vmem_limit = None
    if dbl_buf_bytes > (24 << 20):
        vmem_limit = min(dbl_buf_bytes + (8 << 20), 48 << 20)  # v7x-safe (<64 MiB)

    x_spec = pl.BlockSpec((1, C, TP), lambda b, p: (b, 0, p))
    out_spec = pl.BlockSpec((1, C, TP), lambda b, p: (b, 0, p))
    w1t_spec = pl.BlockSpec((Hd, C), lambda b, p: (0, 0))
    tb_spec = pl.BlockSpec((1, Hd, 1), lambda b, p: (b, 0, 0))
    w2ta_spec = pl.BlockSpec((1, C, Hd), lambda b, p: (b, 0, 0))
    b2a_spec = pl.BlockSpec((1, C, 1), lambda b, p: (b, 0, 0))

    mean_bchw = pl.pallas_call(
        ndm_kernel,
        out_shape=jax.ShapeDtypeStruct((B, C, HW), io_dtype),
        grid=grid,
        in_specs=[x_spec, w1t_spec, tb_spec, w2ta_spec, b2a_spec],
        out_specs=out_spec,
        compiler_params=pltpu.CompilerParams(
            dimension_semantics=("parallel", "parallel"),
            vmem_limit_bytes=vmem_limit),
    )(x_io, w1t, t_bias, w2ta, b2a)

    mean = mean_bchw.reshape(B, C, H, W)               # free reshape back
    return mean, sigma, alpha


def init_params(key, C, Hd):
    k1, k2, k3 = jax.random.split(key, 3)
    return {
        "w1": jax.random.normal(k1, (C, Hd), jnp.float32) * 0.2,
        "wt": jax.random.normal(k2, (1, Hd), jnp.float32) * 0.2,
        "b1": jnp.zeros((1, Hd), jnp.float32),
        "w2": jax.random.normal(k3, (Hd, C), jnp.float32) * 0.2,
        "b2": jnp.zeros((1, C), jnp.float32),
    }


def _reference(x, t, params):
    """Pure-JAX f32 reference of ndm.forward with the same synthetic net."""
    x = x.astype(jnp.float32)
    t = t.astype(jnp.float32)
    B, C, H, W = x.shape
    x_rows = jnp.transpose(x, (0, 2, 3, 1)).reshape(-1, C)
    t_rows = jnp.broadcast_to(t.reshape(B, 1, 1), (B, H * W, 1)).reshape(-1, 1)
    h = jnp.tanh(x_rows @ params["w1"] + t_rows @ params["wt"] + params["b1"])
    net_rows = h @ params["w2"] + params["b2"]
    net_out = jnp.transpose(net_rows.reshape(B, H, W, C), (0, 3, 1, 2))
    s = (0.99 - t) * 0.0001
    q = jnp.sqrt(t + s)
    alpha = jnp.sqrt(1.0 - q)
    sigma = jnp.sqrt(q)
    return alpha * net_out, sigma, alpha


if __name__ == "__main__":
    B, C, H, W = 2, 4, 16, 16
    Hd = 32

    key = jax.random.PRNGKey(0)
    kx, kt, kp = jax.random.split(key, 3)
    # bf16 storage for x exercises the halved-bandwidth I/O path (v6e/v7x);
    # bf16 -> f32 is exact, so the f32 reference sees identical input values.
    x = jax.random.normal(kx, (B, C, H, W), jnp.float32).astype(jnp.bfloat16)
    t = jax.random.uniform(kt, (B, 1, 1, 1), jnp.float32,
                           minval=0.01, maxval=0.98)
    params = init_params(kp, C, Hd)

    mean, sigma, alpha = ndm_forward(x, t, params)
    jax.block_until_ready((mean, sigma, alpha))

    mean_ref, sigma_ref, alpha_ref = _reference(x, t, params)
    assert mean.shape == (B, C, H, W) and mean.dtype == jnp.bfloat16
    assert sigma.shape == (B, 1, 1, 1) and alpha.shape == (B, 1, 1, 1)
    # mean is stored in bf16 -> loosened tolerance vs. the f32 reference.
    assert jnp.allclose(mean.astype(jnp.float32), mean_ref, atol=2e-2, rtol=2e-2)
    assert jnp.allclose(sigma, sigma_ref, atol=1e-6)
    assert jnp.allclose(alpha, alpha_ref, atol=1e-6)

    print("KERNEL_OK")
</pallas_src>

<mosaic_0001>
module attributes {stable_mosaic.version = 11 : i64} {
  func.func @ndm_kernel(%arg0: i32, %arg1: i32, %arg2: memref<1x4x256xbf16, #tpu.memory_space<vmem>>, %arg3: memref<32x4xf32, #tpu.memory_space<vmem>>, %arg4: memref<1x32x1xf32, #tpu.memory_space<vmem>>, %arg5: memref<1x4x32xf32, #tpu.memory_space<vmem>>, %arg6: memref<1x4x1xf32, #tpu.memory_space<vmem>>, %arg7: memref<1x4x256xbf16, #tpu.memory_space<vmem>>) attributes {dimension_semantics = [#tpu.dimension_semantics<parallel>, #tpu.dimension_semantics<parallel>], iteration_bounds = array<i64: 2, 1>, scalar_prefetch = 0 : i64, scratch_operands = 0 : i64, tpu.core_type = #tpu.core_type<tc>, window_params = [{transform_indices = @transform_0, window_bounds = array<i64: 1, 4, 256>}, {pipeline_mode = #tpu.pipeline_mode<synchronous>, transform_indices = @transform_1, window_bounds = array<i64: 32, 4>}, {transform_indices = @transform_2, window_bounds = array<i64: 1, 32, 1>}, {transform_indices = @transform_3, window_bounds = array<i64: 1, 4, 32>}, {transform_indices = @transform_4, window_bounds = array<i64: 1, 4, 1>}, {transform_indices = @transform_5, window_bounds = array<i64: 1, 4, 256>}]} {
    %c0 = arith.constant 0 : index
    %c0_0 = arith.constant 0 : index
    %c0_1 = arith.constant 0 : index
    %0 = vector.load %arg2[%c0, %c0_0, %c0_1] : memref<1x4x256xbf16, #tpu.memory_space<vmem>>, vector<1x4x256xbf16>
    %1 = vector.shape_cast %0 : vector<1x4x256xbf16> to vector<4x256xbf16>
    %2 = arith.extf %1 : vector<4x256xbf16> to vector<4x256xf32>
    %c0_2 = arith.constant 0 : index
    %c0_3 = arith.constant 0 : index
    %3 = vector.load %arg3[%c0_2, %c0_3] : memref<32x4xf32, #tpu.memory_space<vmem>>, vector<32x4xf32>
    %cst = arith.constant dense<0.000000e+00> : vector<32x256xf32>
    %4 = tpu.matmul %3, %2, %cst {dimension_numbers = #tpu.dot_dimension_numbers<[1], [0], [0], [1], [0, 0, 1, 1], [], []>} : vector<32x4xf32>, vector<4x256xf32>, vector<32x256xf32> -> vector<32x256xf32>
    %c0_4 = arith.constant 0 : index
    %c0_5 = arith.constant 0 : index
    %c0_6 = arith.constant 0 : index
    %5 = vector.load %arg4[%c0_4, %c0_5, %c0_6] : memref<1x32x1xf32, #tpu.memory_space<vmem>>, vector<1x32x1xf32>
    %6 = vector.shape_cast %5 : vector<1x32x1xf32> to vector<32x1xf32>
    %7 = vector.broadcast %6 : vector<32x1xf32> to vector<32x256xf32>
    %8 = arith.addf %4, %7 : vector<32x256xf32>
    %9 = math.tanh %8 : vector<32x256xf32>
    %c0_7 = arith.constant 0 : index
    %c0_8 = arith.constant 0 : index
    %c0_9 = arith.constant 0 : index
    %10 = vector.load %arg5[%c0_7, %c0_8, %c0_9] : memref<1x4x32xf32, #tpu.memory_space<vmem>>, vector<1x4x32xf32>
    %11 = vector.shape_cast %10 : vector<1x4x32xf32> to vector<4x32xf32>
    %cst_10 = arith.constant dense<0.000000e+00> : vector<4x256xf32>
    %12 = tpu.matmul %11, %9, %cst_10 {dimension_numbers = #tpu.dot_dimension_numbers<[1], [0], [0], [1], [0, 0, 1, 1], [], []>} : vector<4x32xf32>, vector<32x256xf32>, vector<4x256xf32> -> vector<4x256xf32>
    %c0_11 = arith.constant 0 : index
    %c0_12 = arith.constant 0 : index
    %c0_13 = arith.constant 0 : index
    %13 = vector.load %arg6[%c0_11, %c0_12, %c0_13] : memref<1x4x1xf32, #tpu.memory_space<vmem>>, vector<1x4x1xf32>
    %14 = vector.shape_cast %13 : vector<1x4x1xf32> to vector<4x1xf32>
    %15 = vector.broadcast %14 : vector<4x1xf32> to vector<4x256xf32>
    %16 = arith.addf %12, %15 : vector<4x256xf32>
    %17 = arith.truncf %16 : vector<4x256xf32> to vector<4x256xbf16>
    %c0_14 = arith.constant 0 : index
    %c0_15 = arith.constant 0 : index
    %c0_16 = arith.constant 0 : index
    %18 = vector.load %arg7[%c0_14, %c0_15, %c0_16] : memref<1x4x256xbf16, #tpu.memory_space<vmem>>, vector<1x4x256xbf16>
    %19 = vector.shape_cast %18 : vector<1x4x256xbf16> to vector<4x256xbf16>
    %20 = vector.shape_cast %17 : vector<4x256xbf16> to vector<1x4x256xbf16>
    tpu.vector_store %arg7[%c0_14, %c0_15, %c0_16], %20 {strides = array<i32>} : memref<1x4x256xbf16, #tpu.memory_space<vmem>>, vector<1x4x256xbf16>,
    return
  }
  func.func @transform_0(%arg0: i32, %arg1: i32) -> (i32, i32, i32) {
    %c0_i32 = arith.constant 0 : i32
    %c0_i32_0 = arith.constant 0 : i32
    return %arg0, %c0_i32, %arg1 : i32, i32, i32
  }
  func.func @transform_1(%arg0: i32, %arg1: i32) -> (i32, i32) {
    %c0_i32 = arith.constant 0 : i32
    %c0_i32_0 = arith.constant 0 : i32
    %c0_i32_1 = arith.constant 0 : i32
    return %c0_i32, %c0_i32_0 : i32, i32
  }
  func.func @transform_2(%arg0: i32, %arg1: i32) -> (i32, i32, i32) {
    %c0_i32 = arith.constant 0 : i32
    %c0_i32_0 = arith.constant 0 : i32
    %c0_i32_1 = arith.constant 0 : i32
    return %arg0, %c0_i32, %c0_i32_0 : i32, i32, i32
  }
  func.func @transform_3(%arg0: i32, %arg1: i32) -> (i32, i32, i32) {
    %c0_i32 = arith.constant 0 : i32
    %c0_i32_0 = arith.constant 0 : i32
    %c0_i32_1 = arith.constant 0 : i32
    return %arg0, %c0_i32, %c0_i32_0 : i32, i32, i32
  }
  func.func @transform_4(%arg0: i32, %arg1: i32) -> (i32, i32, i32) {
    %c0_i32 = arith.constant 0 : i32
    %c0_i32_0 = arith.constant 0 : i32
    %c0_i32_1 = arith.constant 0 : i32
    return %arg0, %c0_i32, %c0_i32_0 : i32, i32, i32
  }
  func.func @transform_5(%arg0: i32, %arg1: i32) -> (i32, i32, i32) {
    %c0_i32 = arith.constant 0 : i32
    %c0_i32_0 = arith.constant 0 : i32
    return %arg0, %c0_i32, %arg1 : i32, i32, i32
  }
}

</mosaic_0001>

<bundles_post_ra>
// kernel: tpu_custom_call.1
= control target key start
LH: loop header
LB: loop body
LE: loop exit
PB: predicated region body
PF: predicated region fallthrough
CT: control target
= control target key end

     0   :  { %10 = vsyncpa [#allocation3], 0  ;;  %s968_s0 = inlined_call_operand.vmem [shape: bf16[2,4,256], index: 0, kind: input, shape index: {}]   ;;  %s969_s1 = inlined_call_operand.vmem [shape: f32[32,4], index: 1, kind: input, shape index: {}]   ;;  %s970_s2 = inlined_call_operand.vmem [shape: f32[2,32,1], index: 2, kind: input, shape index: {}]   ;;  %s971_s3 = inlined_call_operand.vmem [shape: f32[2,4,32], index: 3, kind: input, shape index: {}]   ;;  %s972_s4 = inlined_call_operand.vmem [shape: f32[2,4,1], index: 4, kind: input, shape index: {}]   ;;  %s973_s5 = inlined_call_operand.hbm [shape: bf16[2,4,256], index: 5, kind: output, shape index: {}]  }
   0x1   :  { %12 = vsyncpa [#allocation3 + $0x1], 0  ;;  %s837_s18 = smov 0   ;;  %s839_s19 = smov 0  }
   0x2   :  { %s841_s20 = smov 0   ;;  %s843_s21 = smov 0  }
   0x3   :  { %s845_s22 = smov 0   ;;  %s847_s23 = smov 0  }
   0x4 LB: > { %s617_s24 = sadd.s32 4294967295, %s804_s23   ;;  %s618_s25 = sadd.s32 4294967294, %s804_s23   ;;  %s804_s23 = sphi %s847_s23, %s18_s23   ;;  %s800_s22 = sphi %s845_s22, %s980_s22   ;;  %s796_s21 = sphi %s843_s21, %s979_s21   ;;  %s792_s20 = sphi %s841_s20, %s978_s20   ;;  %s788_s19 = sphi %s839_s19, %s977_s19   ;;  %s784_s18 = sphi %s837_s18, %s976_s18  }
   0x5   : > { %s30_s26 = sadd.s32 1, %s800_s22  ;;  %s166_s27 = sadd.s32 1, %s792_s20 }
   0x6   : > { %p32_p0 = scmp.ge.s32.totalorder %s30_s26, 2  ;;  %p176_p1 = scmp.ne.s32.totalorder %s792_s20, %s788_s19 }
   0x7   : > { %p177_p2 = scmp.eq.s32.totalorder %s617_s24, 1  ;;  %p182_p3 = scmp.ne.s32.totalorder %s788_s19, %s784_s18 }
   0x8   : > { %s982_s26 = smov (%p32_p0, %s30_s26), 0  ;;  %p183_p5 = scmp.eq.s32.totalorder %s618_s25, 1 }
   0x9   : > { %p877_p4 = por %p177_p2, %p176_p1  ;;  %s161_s29 = ssub.s32 %s800_s22, %s982_s26 }
   0xa   : > { %p621_p6 = scmp.ge.s32.totalorder %s804_s23, 1  ;;  %p164_p7 = scmp.eq.s32.totalorder %s161_s29, 0 }
   0xb   : > { %p884_p8 = por %p183_p5, %p182_p3  ;;  %p239_p9 = scmp.lt.s32.totalorder %s804_s23, 3 }
   0xc   : > { %s890_s6 = scalar_select %p164_p7, %s792_s20, %s166_s27  }
   0xd   : > { %p240_p10 = pnand %p621_p6, %p239_p9 }
   0xe   : > { %p285_p11 = scmp.lt.s32.totalorder (!%p240_p10), %s796_s21, 1  ;;  %s281_s16 = sand.u32 (!%p240_p10), 1, %s788_s19  }
   0xf   : > { %243 = sbr.rel (%p240_p10) target bundleno = 335 (0x14f), region = 40  ;;  %s648_s17 = sshll.u32 (!%p240_p10), %s796_s21, 2 }
  0x10   : > { %s500_s27 = scalar_lea.hbm (!%p240_p10), %s973_s5, %s648_s17  ;;  %s746_s14 = scalar_lea.hbm (!%p240_p10), %s973_s5, 8 }
  0x14   : > { %v806_v0 = vmov 0   ;;  %s286_s7 = scalar_select %p285_p11, %s796_s21, 1  ;;  %vm355_vm0 = vcmask 1043456   ;;  %v310_v7 = vld [vmem:[%s969_s1] sm:$0xff]  ;;  %vm342_vm1 = vcmask 31744   ;;  %v313_v10 = vld [vmem:[%s969_s1 + $0x18] sm:$0xff] }
  0x15   : > { %708 = vset.pattern.permute.xlu1 %v806_v0  ;;  %707 = vset.pattern.permute.xlu0 %v806_v0  ;;  %v311_v11 = vld [vmem:[%s969_s1 + $0x8] sm:$0xff]  ;;  %v312_v12 = vld [vmem:[%s969_s1 + $0x10] sm:$0xff]  ;;  %vm433_vm2 = vcmask 261120   ;;  %vm480_vm3 = vcmask 1041408   ;;  %s487_s21 = scalar_lea.sflag [#allocation3], %s281_s16 }
  0x16   : > { %709 = vset.pattern.permute.xlu2 %v806_v0  ;;  %s894_s8 = sshll.u32 %s286_s7, 2  ;;  %s647_s9 = sshll.u32 %s286_s7, 5 }
  0x17   : > { %s292_s12 = scalar_lea.vmem %s968_s0, %s894_s8  ;;  %s298_s15 = scalar_lea.vmem %s970_s2, %s647_s9 }
  0x18   : > { %v308_v1 = vld [vmem:[%s292_s12] sm:$0xf]  ;;  %v315_v2 = vld [vmem:[%s298_s15 + $0x8] sm:$0xff]  ;;  %v317_v3 = vld [vmem:[%s298_s15 + $0x18] sm:$0xff]  ;;  %s306_s12 = scalar_lea.vmem %s972_s4, %s894_s8  ;;  %s504_s9 = sshll.u32 %s500_s27, 4  ;;  %s505_s9 = int_to_ptr.hbm [resolvable:$true] %s504_s9 }
  0x19   : > { %v309_v4 = vunpack.c.l.bf16 %v308_v1  ;;  %325 = vperm.xlu1 %708, %v315_v2   ;;  %335 = vperm.xlu0 %707, %v317_v3   ;;  %v314_v5 = vld [vmem:[%s298_s15] sm:$0xff]  ;;  %v316_v6 = vld [vmem:[%s298_s15 + $0x10] sm:$0xff]  ;;  %s302_s15 = scalar_lea.vmem %s971_s3, %s894_s8  ;;  %s622_s8 = sshll.u32 %s281_s16, 2 }
  0x1a   : > { %v427_v15 = vld [vmem:[%s306_s12] sm:$0xf]  ;;  %s283_s29 = scalar_lea.vmem [#allocation2], %s622_s8  ;;  %s740_s10 = sshra.s32 %s505_s9, 4  ;;  %s741_s10 = int_to_ptr.hbm [resolvable:$true] %s740_s10 }
  0x1b   : > { %339 = vst [vmem:[#allocation1] ss:$2 sm:$0xff] %v309_v4  ;;  %430 = vperm.xlu2 %709, %v427_v15   ;;  %v426_v40 = vld [vmem:[%s302_s15] sm:$0xf]  ;;  %s502_s7 = sshll.u32 %s283_s29, 4  ;;  %s742_s11 = scalar_lea.hbm %s741_s10, 4  ;;  %s503_s7 = int_to_ptr.vmem [resolvable:$true] %s502_s7 }
  0x1c   : > { %p743_p12 = scmp.ne.s32.totalorder %s741_s10, %s742_s11  ;;  %p747_p1 = scmp.lt.s32.totalorder %s741_s10, %s973_s5 }
  0x1d   : > { %p748_p2 = scmp.lt.s32.totalorder %s746_s14, %s742_s11 }
  0x1e   : > { %p744_p13 = pnand %p743_p12, %p877_p4 }
  0x1f   : > { %p749_p3 = por %p748_p2, %p747_p1 }
  0x20   : > { %p745_p0 = pneg %p744_p13 }
  0x21   : > { %320 = vperm.xlu1 %708, %v314_v5   ;;  %330 = vperm.xlu0 %707, %v316_v6  }
  0x22   : > { %v340_v8 = vld.sshfl [vmem:[#allocation1] sm:$0xff pattern:$0x75316420]  ;;  %v341_v9 = vld.sshfl [vmem:[#allocation1 + $0x8] sm:$0xff pattern:$0x75316420]  ;;  %p750_p5 = pnand %p749_p3, %p745_p0 }
  0x23   : > { %629 = vmatpush.msk.msra.mxu0 %vm355_vm0, %v340_v8  ;;  %634 = vmatpush.msk.msra.mxu1 %vm355_vm0, %v341_v9 }
  0x24   : > { %630 = vmatmul.msk.f32.vlgmr.msra.gmra.mxu0 %vm342_vm1, %v310_v7  ;;  %635 = vmatmul.msk.f32.vlgmr.msra.gmra.mxu1 %vm342_vm1, %v310_v7 }
  0x25   : > { %649 = vmatpush.msk.msra.mxu2 %vm355_vm0, %v340_v8  ;;  %650 = vmatpush.msk.msra.mxu3 %vm355_vm0, %v341_v9 }
  0x26   : > { %633 = vmatmul.msk.f32.vlgmr.msra.gmra.mxu2 %vm342_vm1, %v313_v10  ;;  %638 = vmatmul.msk.f32.vlgmr.msra.gmra.mxu3 %vm342_vm1, %v313_v10 }
  0x2c   : > { %631 = vmatmul.msk.f32.gmra.mxu0 %vm342_vm1, %v311_v11  ;;  %636 = vmatmul.msk.f32.gmra.mxu1 %vm342_vm1, %v311_v11 }
  0x34   : > { %632 = vmatmul.msk.f32.gmra.mxu0 %vm342_vm1, %v312_v12  ;;  %637 = vmatmul.msk.f32.gmra.mxu1 %vm342_vm1, %v312_v12 }
  0x75   : > { %v431_v43 = vpop.permute.xlu2 %430 }
  0x8b   : > { %v326_v16 = vpop.permute.xlu1 %325  ;;  %v336_v17 = vpop.permute.xlu0 %335 }
  0x93   : > { %v321_v24 = vpop.permute.xlu1 %320  ;;  %v331_v25 = vpop.permute.xlu0 %330 }
  0xa1   : > { %v377_v13 = vpop.f32.mrf.mxu0  ;;  %v406_v14 = vpop.f32.mrf.mxu1 }
  0xa2   : > { %v378_v33 = vadd.f32 %v377_v13, %v321_v24  ;;  %v407_v35 = vadd.f32 %v406_v14, %v321_v24 }
  0xa9   : > { %v380_v18 = vpop.f32.mrf.mxu0  ;;  %v386_v19 = vpop.f32.mrf.mxu2 }
  0xaa   : > { %v387_v20 = vadd.f32 %v386_v19, %v336_v17  ;;  %v409_v21 = vpop.f32.mrf.mxu1  ;;  %v415_v22 = vpop.f32.mrf.mxu3  ;;  %v381_v27 = vadd.f32 %v380_v18, %v326_v16 }
  0xab   : > { %v416_v23 = vadd.f32 %v415_v22, %v336_v17  ;;  %v410_v31 = vadd.f32 %v409_v21, %v326_v16 }
  0xac   : > { %710 = vtanh.f32 %v387_v20 }
  0xad   : > { %712 = vtanh.f32 %v416_v23 }
  0xb1   : > { %v383_v26 = vpop.f32.mrf.mxu0 }
  0xb2   : > { %v384_v28 = vadd.f32 %v383_v26, %v331_v25  ;;  %v412_v29 = vpop.f32.mrf.mxu1  ;;  %v711_v30 = vpop.eup %710 }
  0xb3   : > { %v413_v32 = vadd.f32 %v412_v29, %v331_v25  ;;  %449 = vmatpush.msrb.mxu2 %v711_v30  ;;  %v713_v34 = vpop.eup %712 }
  0xb4   : > { %714 = vtanh.f32 %v384_v28  ;;  %469 = vmatpush.msrb.mxu3 %v713_v34 }
  0xb5   : > { %716 = vtanh.f32 %v413_v32 }
  0xb6   : > { %718 = vtanh.f32 %v381_v27 }
  0xb7   : > { %720 = vtanh.f32 %v410_v31 }
  0xb8   : > { %722 = vtanh.f32 %v378_v33 }
  0xb9   : > { %724 = vtanh.f32 %v407_v35 }
  0xba   : > { %v715_v36 = vpop.eup %714 }
  0xbb   : > { %v717_v37 = vpop.eup %716  ;;  %450 = vmatpush.msrb.mxu2 %v715_v36 }
  0xbc   : > { %v719_v38 = vpop.eup %718  ;;  %470 = vmatpush.msrb.mxu3 %v717_v37 }
  0xbd   : > { %v721_v39 = vpop.eup %720  ;;  %451 = vmatpush.msrb.mxu2 %v719_v38 }
  0xbe   : > { %v723_v41 = vpop.eup %722  ;;  %471 = vmatpush.msrb.mxu3 %v721_v39 }
  0xbf   : > { %v725_v42 = vpop.eup %724  ;;  %452 = vmatpush.msrb.mxu2 %v723_v41 }
  0xc0   : > { %472 = vmatpush.msrb.mxu3 %v725_v42  ;;  %639 = vmatmul.msk.f32.vlgmr.msrb.gmra.mxu2 %vm433_vm2, %v426_v40 }
  0xc1   : > { %640 = vmatmul.msk.f32.vlgmr.msrb.gmra.mxu3 %vm433_vm2, %v426_v40 }
 0x143   : > { %v454_v44 = vpop.f32.mrf.mxu2 }
 0x144   : > { %v455_v45 = vadd.f32 %v454_v44, %v431_v43  ;;  %v474_v46 = vpop.f32.mrf.mxu3 }
 0x145   : > { %v475_v47 = vadd.f32 %v474_v46, %v431_v43 }
 0x147   : > { %v477_v48 = vpack.c.bf16 %v475_v47, %v455_v45 }
 0x149   : > { %v479_v49 = vrot.slane %v477_v48, 2 }
 0x14b   : > { %v483_v50 = vsel %vm480_vm3, %v477_v48, %v479_v49 }
 0x14c   : > { %485 = vst [vmem:[%s283_s29] sm:$0xf] %v483_v50 }
 0x14d   : > { %753 = shalt.err (!%p750_p5)
}
 0x14e   : > { %651 = dma.vmem_to_hbm [thread:$0]  (%p877_p4), %s503_s7, 64, %s505_s9, %s487_s21  }
 0x14f PF: > { %p657_p6 = scmp.ge.s32.totalorder %s804_s23, 2  ;;  %s516_s16 = sand.u32 1, %s784_s18  }
 0x150   : > { %s517_s17 = scalar_lea.sflag [#allocation3], %s516_s16 }
 0x151   : > { %p654_p7 = pnand %p657_p6, %p884_p8 }
 0x153   : > { %p655_p9 = pneg %p654_p7 }
 0x155   : > { %779 = dma.done.wait (%p655_p9), %s517_s17, 64  }
 0x156   : > { %781 = vsyncadd (%p655_p9), %s517_s17, 4294967232  ;;  %s18_s23 = sadd.s32 1, %s804_s23   ;;  %s976_s18 = smov %s788_s19 }
 0x157   : > { %p15_p10 = scmp.ge.s32.totalorder %s18_s23, 4   ;;  %s977_s19 = smov %s792_s20 }
 0x158   : > { %s978_s20 = smov %s890_s6  ;;  %s979_s21 = smov %s800_s22 }
 0x159   : > { %s980_s22 = smov %s982_s26  ;;  %17 = sbr.rel (!%p15_p10) target bundleno = 4 (0x4), region = 84 }
 0x15e   :  { %523 = vsyncpa [#allocation3], 1 }
 0x15f   :  { %525 = vsyncpa [#allocation3 + $0x1], 1 }

</bundles_post_ra>
